<compile_context>
chip_gen: v6e
topology: v6e:2x2x1
jax: 0.10.0
libtpu: 0.0.40
codegen_flags: <defaults>
</compile_context>

<pallas_src>
import functools

import jax
import jax.numpy as jnp
from jax.experimental import pallas as pl
from jax.experimental.pallas import tpu as pltpu

EPS = 1e-5


def fused_sigmul_conv_bn_kernel(x_ref, s_ref, p_ref, o_ref, *, cin, hw_true):
    # x_ref: [Cin, HW]      NCHW-native flattened input (N == 1), f32
    # s_ref: [1, Cin]       per-channel gate logits (pre-sigmoid), f32
    # p_ref: [Cout, Cin+2]  packed params: [:, :Cin]=conv W (OI), [:, Cin]=gamma, [:, Cin+1]=beta
    # o_ref: [Cout, HW]
    gate = jax.nn.sigmoid(s_ref[...])                              # [1, Cin]     (EUP)
    w_g = p_ref[:, :cin] * gate                                    # gate folded into weight
    y = jnp.dot(w_g, x_ref[...],
                preferred_element_type=jnp.float32)                # [Cout, HW]   (MXU)

    # BatchNorm2d training-mode batch stats over the HW (lane) axis, single pass.
    # Divisor is the *true* element count, so zero-padded lanes (if the caller ever carries a
    # lane-dense padded layout) contribute 0 to both sums and the stats stay exact.
    inv_m = jnp.float32(1.0 / hw_true)
    mean = jnp.sum(y, axis=1, keepdims=True) * inv_m               # [Cout, 1]
    mean_sq = jnp.sum(y * y, axis=1, keepdims=True) * inv_m        # [Cout, 1]
    var = mean_sq - mean * mean                                    # biased variance
    gamma = p_ref[:, cin:cin + 1]                                  # [Cout, 1]
    beta = p_ref[:, cin + 1:cin + 2]                               # [Cout, 1]
    scale = gamma * jax.lax.rsqrt(var + EPS)                       # [Cout, 1]
    shift = beta - mean * scale                                    # [Cout, 1]
    o_ref[...] = (y * scale + shift).astype(o_ref.dtype)           # one FMA per element


def pack_params(w_oi11, gamma, beta):
    """Init-time (once per model, NOT per forward): fold the 1x1 conv weight and the BN affine
    params into a single [Cout, Cin+2] f32 slab so the forward issues one parameter DMA."""
    cout, cin = w_oi11.shape[0], w_oi11.shape[1]
    w2d = jnp.asarray(w_oi11, jnp.float32).reshape(cout, cin)
    g = jnp.asarray(gamma, jnp.float32).reshape(cout, 1)
    b = jnp.asarray(beta, jnp.float32).reshape(cout, 1)
    return jnp.concatenate([w2d, g, b], axis=1)                    # [Cout, Cin+2]


@jax.jit
def sigmul_conv_bn(x_nchw, s_nc11, params):
    """x_nchw: [1, Cin, H, W]; s_nc11: [1, Cin, 1, 1]; params: pack_params() output.
    Returns [1, Cout, H, W] — sigmoid(s) * x  ->  1x1 conv (no bias)  ->  training-mode BN."""
    n, cin, h, w = x_nchw.shape
    assert n == 1, "kernel assumes batch size 1 (per-sample gate broadcast)"
    cout = params.shape[0]
    hw = h * w

    # Pure reshapes (no transposes) — elided/fused by XLA under jit.
    x2d = x_nchw.reshape(cin, hw).astype(jnp.float32)              # [Cin, HW]
    s2d = s_nc11.reshape(1, cin).astype(jnp.float32)               # [1, Cin]

    kernel = functools.partial(fused_sigmul_conv_bn_kernel, cin=cin, hw_true=hw)
    out2d = pl.pallas_call(
        kernel,
        out_shape=jax.ShapeDtypeStruct((cout, hw), jnp.float32),
        in_specs=[
            pl.BlockSpec((cin, hw), lambda: (0, 0)),
            pl.BlockSpec((1, cin), lambda: (0, 0)),
            pl.BlockSpec((cout, cin + 2), lambda: (0, 0)),
        ],
        out_specs=pl.BlockSpec((cout, hw), lambda: (0, 0)),
        # Actual VMEM footprint is ~0.7 MB; modest explicit cap instead of the 32 MiB default.
        compiler_params=pltpu.CompilerParams(vmem_limit_bytes=4 * 1024 * 1024),
    )(x2d, s2d, params)

    return out2d.reshape(n, cout, h, w)


def reference(x_nchw, s_nc11, w_oi11, gamma, beta):
    """Pure-JAX reference matching the PyTorch module's forward (training-mode BN)."""
    gate = jax.nn.sigmoid(s_nc11)                                  # [1, Cin, 1, 1]
    xs = x_nchw * gate
    w = w_oi11[:, :, 0, 0]                                         # [Cout, Cin]
    y = jnp.einsum("nchw,oc->nohw", xs, w)                         # 1x1 conv, no bias
    mean = jnp.mean(y, axis=(0, 2, 3), keepdims=True)
    var = jnp.mean((y - mean) ** 2, axis=(0, 2, 3), keepdims=True)
    yhat = (y - mean) / jnp.sqrt(var + EPS)
    return yhat * gamma.reshape(1, -1, 1, 1) + beta.reshape(1, -1, 1, 1)


if __name__ == "__main__":
    N, Cin, Cout, H, W = 1, 240, 80, 14, 14

    key = jax.random.PRNGKey(0)
    kx, ks, kw, kg, kb = jax.random.split(key, 5)
    x79 = jax.random.normal(kx, (N, Cin, H, W), dtype=jnp.float32)       # input feature map
    x83 = jax.random.normal(ks, (N, Cin, 1, 1), dtype=jnp.float32)       # SE gate logits
    # Conv2d(240, 80, 1x1, bias=False) weight, deterministic init.
    conv_w = jax.random.normal(kw, (Cout, Cin, 1, 1), dtype=jnp.float32) * 0.05
    # BatchNorm2d(80) affine params (perturbed from the 1/0 default so the packed-param
    # extraction path is actually exercised by the check).
    gamma = 1.0 + 0.1 * jax.random.normal(kg, (Cout,), dtype=jnp.float32)
    beta = 0.1 * jax.random.normal(kb, (Cout,), dtype=jnp.float32)

    params = pack_params(conv_w, gamma, beta)                            # init-time, one DMA slab

    out = jax.block_until_ready(sigmul_conv_bn(x79, x83, params))
    ref = jax.block_until_ready(reference(x79, x83, conv_w, gamma, beta))

    assert out.shape == (N, Cout, H, W), out.shape
    assert jnp.allclose(out, ref, rtol=1e-4, atol=1e-4), float(jnp.max(jnp.abs(out - ref)))

    print("KERNEL_OK")
</pallas_src>

<mosaic_0001>
module attributes {stable_mosaic.version = 11 : i64} {
  func.func @fused_sigmul_conv_bn_kernel(%arg0: memref<240x196xf32, #tpu.memory_space<vmem>>, %arg1: memref<1x240xf32, #tpu.memory_space<vmem>>, %arg2: memref<80x242xf32, #tpu.memory_space<vmem>>, %arg3: memref<80x196xf32, #tpu.memory_space<vmem>>) attributes {dimension_semantics = [], scalar_prefetch = 0 : i64, scratch_operands = 0 : i64, tpu.core_type = #tpu.core_type<tc>} {
    %c0 = arith.constant 0 : index
    %c0_0 = arith.constant 0 : index
    %0 = vector.load %arg1[%c0, %c0_0] : memref<1x240xf32, #tpu.memory_space<vmem>>, vector<1x240xf32>
    %1 = arith.negf %0 : vector<1x240xf32>
    %2 = math.exp %1 : vector<1x240xf32>
    %cst = arith.constant 1.000000e+00 : f32
    %3 = vector.broadcast %cst : f32 to vector<1x240xf32>
    %4 = arith.addf %3, %2 : vector<1x240xf32>
    %5 = arith.divf %3, %4 : vector<1x240xf32>
    %c0_1 = arith.constant 0 : index
    %c0_2 = arith.constant 0 : index
    %6 = vector.load %arg2[%c0_1, %c0_2] : memref<80x242xf32, #tpu.memory_space<vmem>>, vector<80x240xf32>
    %7 = vector.broadcast %5 : vector<1x240xf32> to vector<80x240xf32>
    %8 = arith.mulf %6, %7 : vector<80x240xf32>
    %c0_3 = arith.constant 0 : index
    %c0_4 = arith.constant 0 : index
    %9 = vector.load %arg0[%c0_3, %c0_4] : memref<240x196xf32, #tpu.memory_space<vmem>>, vector<240x196xf32>
    %cst_5 = arith.constant dense<0.000000e+00> : vector<80x196xf32>
    %10 = tpu.matmul %8, %9, %cst_5 {dimension_numbers = #tpu.dot_dimension_numbers<[1], [0], [0], [1], [0, 0, 1, 1], [], []>} : vector<80x240xf32>, vector<240x196xf32>, vector<80x196xf32> -> vector<80x196xf32>
    %cst_6 = arith.constant dense<0.000000e+00> : vector<80xf32>
    %11 = vector.multi_reduction <add>, %10, %cst_6 [1] : vector<80x196xf32> to vector<80xf32>
    %12 = vector.shape_cast %11 : vector<80xf32> to vector<80x1xf32>
    %cst_7 = arith.constant 0.00510204071 : f32
    %13 = vector.broadcast %cst_7 : f32 to vector<80x1xf32>
    %14 = arith.mulf %12, %13 : vector<80x1xf32>
    %15 = arith.mulf %10, %10 : vector<80x196xf32>
    %cst_8 = arith.constant dense<0.000000e+00> : vector<80xf32>
    %16 = vector.multi_reduction <add>, %15, %cst_8 [1] : vector<80x196xf32> to vector<80xf32>
    %17 = vector.shape_cast %16 : vector<80xf32> to vector<80x1xf32>
    %cst_9 = arith.constant 0.00510204071 : f32
    %18 = vector.broadcast %cst_9 : f32 to vector<80x1xf32>
    %19 = arith.mulf %17, %18 : vector<80x1xf32>
    %20 = arith.mulf %14, %14 : vector<80x1xf32>
    %21 = arith.subf %19, %20 : vector<80x1xf32>
    %c0_10 = arith.constant 0 : index
    %c240 = arith.constant 240 : index
    %22 = vector.load %arg2[%c0_10, %c240] : memref<80x242xf32, #tpu.memory_space<vmem>>, vector<80x1xf32>
    %c0_11 = arith.constant 0 : index
    %c241 = arith.constant 241 : index
    %23 = vector.load %arg2[%c0_11, %c241] : memref<80x242xf32, #tpu.memory_space<vmem>>, vector<80x1xf32>
    %cst_12 = arith.constant 9.99999974E-6 : f32
    %24 = vector.broadcast %cst_12 : f32 to vector<80x1xf32>
    %25 = arith.addf %21, %24 : vector<80x1xf32>
    %26 = math.rsqrt %25 : vector<80x1xf32>
    %27 = arith.mulf %22, %26 : vector<80x1xf32>
    %28 = arith.mulf %14, %27 : vector<80x1xf32>
    %29 = arith.subf %23, %28 : vector<80x1xf32>
    %30 = vector.broadcast %27 : vector<80x1xf32> to vector<80x196xf32>
    %31 = arith.mulf %10, %30 : vector<80x196xf32>
    %32 = vector.broadcast %29 : vector<80x1xf32> to vector<80x196xf32>
    %33 = arith.addf %31, %32 : vector<80x196xf32>
    %c0_13 = arith.constant 0 : index
    %c0_14 = arith.constant 0 : index
    %34 = vector.load %arg3[%c0_13, %c0_14] : memref<80x196xf32, #tpu.memory_space<vmem>>, vector<80x196xf32>
    tpu.vector_store %arg3[%c0_13, %c0_14], %33 {strides = array<i32>} : memref<80x196xf32, #tpu.memory_space<vmem>>, vector<80x196xf32>,
    return
  }
}

</mosaic_0001>

<bundles_post_ra>
// kernel: sigmul_conv_bn.1
= control target key start
LH: loop header
LB: loop body
LE: loop exit
PB: predicated region body
PF: predicated region fallthrough
CT: control target
= control target key end

     0   :  { %v42_v48 = vlaneseq  ;;  %vm132_vm0 = vcmask 916480   ;;  %vm288_vm1 = vcmask 556032   ;;  %s1378_s0 = inlined_call_operand.vmem [shape: f32[240,196], index: 0, kind: input, shape index: {}]   ;;  %s1379_s1 = inlined_call_operand.vmem [shape: f32[1,240], index: 1, kind: input, shape index: {}]   ;;  %s1380_s2 = inlined_call_operand.vmem [shape: f32[80,242], index: 2, kind: input, shape index: {}]   ;;  %s1381_s3 = inlined_call_operand.vmem [shape: f32[80,196], index: 3, kind: output, shape index: {}]  }
   0x1   :  { %v103_v0 = vld [vmem:[%s1378_s0 + $0xf8] sm:$0xff]  ;;  %v102_v1 = vld [vmem:[%s1378_s0 + $0xf0] sm:$0xff]  ;;  %v101_v2 = vld [vmem:[%s1378_s0 + $0xe8] sm:$0xff] }
   0x2   :  { %163 = vmatprep.subr.mxu0 %v103_v0  ;;  %694 = vmatprep.subr.mxu1 %v103_v0  ;;  %v100_v3 = vld [vmem:[%s1378_s0 + $0xe0] sm:$0xff]  ;;  %v99_v4 = vld [vmem:[%s1378_s0 + $0xd8] sm:$0xff]  ;;  %v98_v5 = vld [vmem:[%s1378_s0 + $0xd0] sm:$0xff]  ;;  %v43_v53 = vshrl.u32 %v42_v48, 7 }
   0x3   :  { %164 = vmatpush1.msra.mxu0 %v102_v1  ;;  %724 = vmatpush1.msra.mxu1 %v102_v1  ;;  %v97_v6 = vld [vmem:[%s1378_s0 + $0xc8] sm:$0xff]  ;;  %v96_v7 = vld [vmem:[%s1378_s0 + $0xc0] sm:$0xff]  ;;  %v95_v8 = vld [vmem:[%s1378_s0 + $0xb8] sm:$0xff] }
   0x4   :  { %165 = vmatprep.subr.mxu0 %v101_v2  ;;  %695 = vmatprep.subr.mxu1 %v101_v2  ;;  %v94_v9 = vld [vmem:[%s1378_s0 + $0xb0] sm:$0xff]  ;;  %v93_v10 = vld [vmem:[%s1378_s0 + $0xa8] sm:$0xff]  ;;  %v92_v11 = vld [vmem:[%s1378_s0 + $0xa0] sm:$0xff]  ;;  %v48_v58 = vsub.s32 1, %v43_v53  ;;  %v44_v60 = vsub.s32 0, %v43_v53 }
   0x5   :  { %166 = vmatpush1.msra.mxu0 %v100_v3  ;;  %725 = vmatpush1.msra.mxu1 %v100_v3  ;;  %v91_v12 = vld [vmem:[%s1378_s0 + $0x98] sm:$0xff]  ;;  %v90_v13 = vld [vmem:[%s1378_s0 + $0x90] sm:$0xff]  ;;  %v89_v14 = vld [vmem:[%s1378_s0 + $0x88] sm:$0xff] }
   0x6   :  { %167 = vmatprep.subr.mxu0 %v99_v4  ;;  %696 = vmatprep.subr.mxu1 %v99_v4  ;;  %v88_v15 = vld [vmem:[%s1378_s0 + $0x80] sm:$0xff]  ;;  %v87_v16 = vld [vmem:[%s1378_s0 + $0x78] sm:$0xff]  ;;  %v86_v17 = vld [vmem:[%s1378_s0 + $0x70] sm:$0xff] }
   0x7   :  { %168 = vmatpush1.msra.mxu0 %v98_v5  ;;  %726 = vmatpush1.msra.mxu1 %v98_v5  ;;  %v85_v18 = vld [vmem:[%s1378_s0 + $0x68] sm:$0xff]  ;;  %v84_v19 = vld [vmem:[%s1378_s0 + $0x60] sm:$0xff]  ;;  %v83_v20 = vld [vmem:[%s1378_s0 + $0x58] sm:$0xff] }
   0x8   :  { %169 = vmatprep.subr.mxu0 %v97_v6  ;;  %697 = vmatprep.subr.mxu1 %v97_v6  ;;  %v82_v21 = vld [vmem:[%s1378_s0 + $0x50] sm:$0xff]  ;;  %v81_v22 = vld [vmem:[%s1378_s0 + $0x48] sm:$0xff]  ;;  %v14_v23 = vld [vmem:[%s1379_s1] sm:$0x3] }
   0x9   :  { %170 = vmatpush1.msra.mxu0 %v96_v7  ;;  %727 = vmatpush1.msra.mxu1 %v96_v7  ;;  %v80_v24 = vld [vmem:[%s1378_s0 + $0x40] sm:$0xff]  ;;  %v683_v25 = vmul.f32 -1.442695, %v14_v23  ;;  %v79_v26 = vld [vmem:[%s1378_s0 + $0x38] sm:$0xff]  ;;  %v78_v27 = vld [vmem:[%s1378_s0 + $0x30] sm:$0xff] }
   0xa   :  { %171 = vmatprep.subr.mxu0 %v95_v8  ;;  %698 = vmatprep.subr.mxu1 %v95_v8  ;;  %v77_v28 = vld [vmem:[%s1378_s0 + $0x28] sm:$0xff]  ;;  %v76_v29 = vld [vmem:[%s1378_s0 + $0x20] sm:$0xff]  ;;  %v75_v30 = vld [vmem:[%s1378_s0 + $0x18] sm:$0xff] }
   0xb   :  { %172 = vmatpush1.msra.mxu0 %v94_v9  ;;  %728 = vmatpush1.msra.mxu1 %v94_v9  ;;  %761 = vpow2.f32 %v683_v25  ;;  %v74_v31 = vld [vmem:[%s1378_s0 + $0x10] sm:$0xff]  ;;  %v73_v32 = vld [vmem:[%s1378_s0 + $0x8] sm:$0xff]  ;;  %v72_v33 = vld [vmem:[%s1378_s0] sm:$0xff] }
   0xc   :  { %173 = vmatprep.subr.mxu0 %v93_v10  ;;  %699 = vmatprep.subr.mxu1 %v93_v10  ;;  %v131_v34 = vld [vmem:[%s1378_s0 + $0x1d8] sm:$0xff]  ;;  %v130_v35 = vld [vmem:[%s1378_s0 + $0x1d0] sm:$0xff]  ;;  %v129_v36 = vld [vmem:[%s1378_s0 + $0x1c8] sm:$0xff] }
   0xd   :  { %174 = vmatpush1.msra.mxu0 %v92_v11  ;;  %729 = vmatpush1.msra.mxu1 %v92_v11  ;;  %v128_v37 = vld [vmem:[%s1378_s0 + $0x1c0] sm:$0xff]  ;;  %v127_v38 = vld [vmem:[%s1378_s0 + $0x1b8] sm:$0xff]  ;;  %v126_v39 = vld [vmem:[%s1378_s0 + $0x1b0] sm:$0xff] }
   0xe   :  { %175 = vmatprep.subr.mxu0 %v91_v12  ;;  %700 = vmatprep.subr.mxu1 %v91_v12  ;;  %v125_v41 = vld [vmem:[%s1378_s0 + $0x1a8] sm:$0xff]  ;;  %v124_v42 = vld [vmem:[%s1378_s0 + $0x1a0] sm:$0xff]  ;;  %v123_v44 = vld [vmem:[%s1378_s0 + $0x198] sm:$0xff] }
   0xf   :  { %176 = vmatpush1.msra.mxu0 %v90_v13  ;;  %730 = vmatpush1.msra.mxu1 %v90_v13  ;;  %v122_v45 = vld [vmem:[%s1378_s0 + $0x190] sm:$0xff]  ;;  %v121_v46 = vld [vmem:[%s1378_s0 + $0x188] sm:$0xff]  ;;  %v120_v47 = vld [vmem:[%s1378_s0 + $0x180] sm:$0xff] }
  0x10   :  { %177 = vmatprep.subr.mxu0 %v89_v14  ;;  %701 = vmatprep.subr.mxu1 %v89_v14  ;;  %v119_v49 = vld [vmem:[%s1378_s0 + $0x178] sm:$0xff]  ;;  %v118_v50 = vld [vmem:[%s1378_s0 + $0x170] sm:$0xff]  ;;  %v117_v51 = vld [vmem:[%s1378_s0 + $0x168] sm:$0xff] }
  0x11   :  { %178 = vmatpush1.msra.mxu0 %v88_v15  ;;  %731 = vmatpush1.msra.mxu1 %v88_v15  ;;  %v116_v52 = vld [vmem:[%s1378_s0 + $0x160] sm:$0xff]  ;;  %v115_v54 = vld [vmem:[%s1378_s0 + $0x158] sm:$0xff]  ;;  %v114_v55 = vld [vmem:[%s1378_s0 + $0x150] sm:$0xff] }
  0x12   :  { %179 = vmatprep.subr.mxu0 %v87_v16  ;;  %702 = vmatprep.subr.mxu1 %v87_v16  ;;  %v113_v56 = vld [vmem:[%s1378_s0 + $0x148] sm:$0xff]  ;;  %v112_v57 = vld [vmem:[%s1378_s0 + $0x140] sm:$0xff]  ;;  %v111_v59 = vld [vmem:[%s1378_s0 + $0x138] sm:$0xff] }
  0x13   :  { %180 = vmatpush1.msra.mxu0 %v86_v17  ;;  %732 = vmatpush1.msra.mxu1 %v86_v17  ;;  %v110_v61 = vld [vmem:[%s1378_s0 + $0x130] sm:$0xff]  ;;  %v109_v63 = vld [vmem:[%s1378_s0 + $0x128] sm:$0xff]  ;;  %v108_v0 = vld [vmem:[%s1378_s0 + $0x120] sm:$0xff] }
  0x14   :  { %181 = vmatprep.subr.mxu0 %v85_v18  ;;  %703 = vmatprep.subr.mxu1 %v85_v18  ;;  %v107_v2 = vld [vmem:[%s1378_s0 + $0x118] sm:$0xff]  ;;  %v987_v3 = vld [vmem:[%s1380_s2 + $0x8] sm:$0xff]  ;;  %v106_v6 = vld [vmem:[%s1378_s0 + $0x110] sm:$0xff] }
  0x15   :  { %182 = vmatpush1.msra.mxu0 %v84_v19  ;;  %733 = vmatpush1.msra.mxu1 %v84_v19  ;;  %v992_v4 = vld [vmem:[%s1380_s2 + $0x58] sm:$0xff]  ;;  %v21_v7 = vld [vmem:[%s1380_s2] sm:$0xff]  ;;  %v31_v8 = vld [vmem:[%s1380_s2 + $0x50] sm:$0xff] }
  0x16   :  { %183 = vmatprep.subr.mxu0 %v83_v20  ;;  %704 = vmatprep.subr.mxu1 %v83_v20  ;;  %v105_v9 = vld [vmem:[%s1378_s0 + $0x108] sm:$0xff]  ;;  %v1011_v10 = vld [vmem:[%s1380_s2 + $0x18] sm:$0xff]  ;;  %v104_v12 = vld [vmem:[%s1378_s0 + $0x100] sm:$0xff] }
  0x17   :  { %184 = vmatpush1.msra.mxu0 %v82_v21  ;;  %734 = vmatpush1.msra.mxu1 %v82_v21  ;;  %v1016_v11 = vld [vmem:[%s1380_s2 + $0x68] sm:$0xff]  ;;  %v23_v18 = vld [vmem:[%s1380_s2 + $0x10] sm:$0xff]  ;;  %v33_v20 = vld [vmem:[%s1380_s2 + $0x60] sm:$0xff] }
  0x18   :  { %185 = vmatprep.subr.mxu0 %v81_v22  ;;  %705 = vmatprep.subr.mxu1 %v81_v22  ;;  %v762_v40 = vpop.eup %761  ;;  %v1040_v21 = vld [vmem:[%s1380_s2 + $0x28] sm:$0xff]  ;;  %v1045_v22 = vld [vmem:[%s1380_s2 + $0x78] sm:$0xff] }
  0x19   :  { %186 = vmatpush1.msra.mxu0 %v80_v24  ;;  %735 = vmatpush1.msra.mxu1 %v80_v24  ;;  %v18_v43 = vadd.f32 1.0, %v762_v40 }
  0x1a   :  { %187 = vmatprep.subr.mxu0 %v79_v26  ;;  %706 = vmatprep.subr.mxu1 %v79_v26  ;;  %v25_v26 = vld [vmem:[%s1380_s2 + $0x20] sm:$0xff] }
  0x1b   :  { %188 = vmatpush1.msra.mxu0 %v78_v27  ;;  %736 = vmatpush1.msra.mxu1 %v78_v27  ;;  %763 = vrcp.f32 %v18_v43 }
  0x1c   :  { %189 = vmatprep.subr.mxu0 %v77_v28  ;;  %707 = vmatprep.subr.mxu1 %v77_v28  ;;  %v35_v28 = vld [vmem:[%s1380_s2 + $0x70] sm:$0xff] }
  0x1d   :  { %190 = vmatpush1.msra.mxu0 %v76_v29  ;;  %737 = vmatpush1.msra.mxu1 %v76_v29  ;;  %v1066_v29 = vld [vmem:[%s1380_s2 + $0x38] sm:$0xff] }
  0x1e   :  { %191 = vmatprep.subr.mxu0 %v75_v30  ;;  %708 = vmatprep.subr.mxu1 %v75_v30  ;;  %v1071_v30 = vld [vmem:[%s1380_s2 + $0x88] sm:$0xff] }
  0x1f   :  { %192 = vmatpush1.msra.mxu0 %v74_v31  ;;  %738 = vmatpush1.msra.mxu1 %v74_v31 }
  0x20   :  { %193 = vmatprep.subr.mxu0 %v73_v32  ;;  %709 = vmatprep.subr.mxu1 %v73_v32 }
  0x21   :  { %194 = vmatpush1.msra.mxu0 %v72_v33  ;;  %739 = vmatpush1.msra.mxu1 %v72_v33 }
  0x22   :  { %199 = vmatprep.subr.mxu0 %v131_v34  ;;  %710 = vmatprep.subr.mxu1 %v131_v34 }
  0x23   :  { %200 = vmatpush2.msra.mxu0 %v130_v35  ;;  %740 = vmatpush2.msra.mxu1 %v130_v35  ;;  %v27_v35 = vld [vmem:[%s1380_s2 + $0x30] sm:$0xff] }
  0x24   :  { %201 = vmatprep.subr.mxu0 %v129_v36  ;;  %711 = vmatprep.subr.mxu1 %v129_v36  ;;  %v37_v36 = vld [vmem:[%s1380_s2 + $0x80] sm:$0xff] }
  0x25   :  { %202 = vmatpush2.msra.mxu0 %v128_v37  ;;  %741 = vmatpush2.msra.mxu1 %v128_v37  ;;  %v1090_v37 = vld [vmem:[%s1380_s2 + $0x48] sm:$0xff] }
  0x26   :  { %203 = vmatprep.subr.mxu0 %v127_v38  ;;  %712 = vmatprep.subr.mxu1 %v127_v38  ;;  %v1095_v38 = vld [vmem:[%s1380_s2 + $0x98] sm:$0xff] }
  0x27   :  { %204 = vmatpush2.msra.mxu0 %v126_v39  ;;  %742 = vmatpush2.msra.mxu1 %v126_v39 }
  0x28   :  { %205 = vmatprep.subr.mxu0 %v125_v41  ;;  %713 = vmatprep.subr.mxu1 %v125_v41  ;;  %v764_v62 = vpop.eup %763 }
  0x29   :  { %206 = vmatpush2.msra.mxu0 %v124_v42  ;;  %743 = vmatpush2.msra.mxu1 %v124_v42  ;;  %v979_v1 = vrot.slane %v764_v62, %v48_v58  ;;  %v994_v5 = vrot.slane %v764_v62, %v44_v60  ;;  %v29_v42 = vld [vmem:[%s1380_s2 + $0x40] sm:$0xff] }
  0x2a   :  { %207 = vmatprep.subr.mxu0 %v123_v44  ;;  %714 = vmatprep.subr.mxu1 %v123_v44  ;;  %v39_v44 = vld [vmem:[%s1380_s2 + $0x90] sm:$0xff]  ;;  %s786_s2 = smov 1  }
  0x2b   :  { %208 = vmatpush2.msra.mxu0 %v122_v45  ;;  %744 = vmatpush2.msra.mxu1 %v122_v45  ;;  %v53_v13 = vmul.f32 %v979_v1, %v987_v3  ;;  %v63_v14 = vmul.f32 %v979_v1, %v992_v4  ;;  %v52_v15 = vmul.f32 %v994_v5, %v21_v7 }
  0x2c   :  { %209 = vmatprep.subr.mxu0 %v121_v46  ;;  %715 = vmatprep.subr.mxu1 %v121_v46  ;;  %v62_v16 = vmul.f32 %v994_v5, %v31_v8  ;;  %v55_v17 = vmul.f32 %v979_v1, %v1011_v10  ;;  %v65_v19 = vmul.f32 %v979_v1, %v1016_v11 }
  0x2d   :  { %210 = vmatpush2.msra.mxu0 %v120_v47  ;;  %745 = vmatpush2.msra.mxu1 %v120_v47  ;;  %v54_v23 = vmul.f32 %v994_v5, %v23_v18  ;;  %v64_v24 = vmul.f32 %v994_v5, %v33_v20  ;;  %v57_v25 = vmul.f32 %v979_v1, %v1040_v21 }
  0x2e   :  { %211 = vmatprep.subr.mxu0 %v119_v49  ;;  %716 = vmatprep.subr.mxu1 %v119_v49  ;;  %v67_v27 = vmul.f32 %v979_v1, %v1045_v22  ;;  %v56_v31 = vmul.f32 %v994_v5, %v25_v26  ;;  %v66_v32 = vmul.f32 %v994_v5, %v35_v28 }
  0x2f   :  { %212 = vmatpush2.msra.mxu0 %v118_v50  ;;  %746 = vmatpush2.msra.mxu1 %v118_v50  ;;  %v59_v33 = vmul.f32 %v979_v1, %v1066_v29  ;;  %v69_v34 = vmul.f32 %v979_v1, %v1071_v30  ;;  %v58_v39 = vmul.f32 %v994_v5, %v27_v35 }
  0x30   :  { %213 = vmatprep.subr.mxu0 %v117_v51  ;;  %717 = vmatprep.subr.mxu1 %v117_v51  ;;  %v68_v40 = vmul.f32 %v994_v5, %v37_v36  ;;  %v61_v41 = vmul.f32 %v979_v1, %v1090_v37  ;;  %v71_v43 = vmul.f32 %v979_v1, %v1095_v38 }
  0x31   :  { %214 = vmatpush2.msra.mxu0 %v116_v52  ;;  %747 = vmatpush2.msra.mxu1 %v116_v52  ;;  %v60_v45 = vmul.f32 %v994_v5, %v29_v42  ;;  %v70_v46 = vmul.f32 %v994_v5, %v39_v44 }
  0x32   :  { %215 = vmatprep.subr.mxu0 %v115_v54  ;;  %718 = vmatprep.subr.mxu1 %v115_v54 }
  0x33   :  { %216 = vmatpush2.msra.mxu0 %v114_v55  ;;  %748 = vmatpush2.msra.mxu1 %v114_v55 }
  0x34   :  { %217 = vmatprep.subr.mxu0 %v113_v56  ;;  %719 = vmatprep.subr.mxu1 %v113_v56 }
  0x35   :  { %218 = vmatpush2.msra.mxu0 %v112_v57  ;;  %749 = vmatpush2.msra.mxu1 %v112_v57 }
  0x36   :  { %219 = vmatprep.subr.mxu0 %v111_v59  ;;  %720 = vmatprep.subr.mxu1 %v111_v59 }
  0x37   :  { %220 = vmatpush2.msra.mxu0 %v110_v61  ;;  %750 = vmatpush2.msra.mxu1 %v110_v61 }
  0x38   :  { %221 = vmatprep.subr.mxu0 %v109_v63  ;;  %721 = vmatprep.subr.mxu1 %v109_v63 }
  0x39   :  { %222 = vmatpush2.msra.mxu0 %v108_v0  ;;  %751 = vmatpush2.msra.mxu1 %v108_v0 }
  0x3a   :  { %223 = vmatprep.subr.mxu0 %v107_v2  ;;  %722 = vmatprep.subr.mxu1 %v107_v2 }
  0x3b   :  { %224 = vmatpush2.msra.mxu0 %v106_v6  ;;  %752 = vmatpush2.msra.mxu1 %v106_v6 }
  0x3c   :  { %225 = vmatprep.subr.mxu0 %v105_v9  ;;  %723 = vmatprep.subr.mxu1 %v105_v9 }
  0x3d   :  { %226 = vmatpush2.msra.mxu0 %v104_v12  ;;  %753 = vmatpush2.msra.mxu1 %v104_v12 }
  0x3e   :  { %684 = vmatprep.mubr.msk.f32.mxu0 %vm132_vm0, %v53_v13  ;;  %689 = vmatprep.mubr.msk.f32.mxu1 %vm132_vm0, %v63_v14 }
  0x3f   :  { %228 = vmatmul.mubr.f32.vlgmr.msra.gmra.mxu0 %v52_v15  ;;  %258 = vmatmul.mubr.f32.vlgmr.msra.gmra.mxu1 %v62_v16 }
  0x40   :  { %685 = vmatprep.mubr.msk.f32.mxu0 %vm132_vm0, %v55_v17  ;;  %690 = vmatprep.mubr.msk.f32.mxu1 %vm132_vm0, %v65_v19 }
  0x43   :  { %234 = vmatmul.mubr.f32.gmra.mxu0 %v54_v23  ;;  %264 = vmatmul.mubr.f32.gmra.mxu1 %v64_v24 }
  0x44   :  { %686 = vmatprep.mubr.msk.f32.mxu0 %vm132_vm0, %v57_v25  ;;  %691 = vmatprep.mubr.msk.f32.mxu1 %vm132_vm0, %v67_v27 }
  0x47   :  { %240 = vmatmul.mubr.f32.gmra.mxu0 %v56_v31  ;;  %270 = vmatmul.mubr.f32.gmra.mxu1 %v66_v32 }
  0x48   :  { %687 = vmatprep.mubr.msk.f32.mxu0 %vm132_vm0, %v59_v33  ;;  %692 = vmatprep.mubr.msk.f32.mxu1 %vm132_vm0, %v69_v34 }
  0x4b   :  { %246 = vmatmul.mubr.f32.gmra.mxu0 %v58_v39  ;;  %276 = vmatmul.mubr.f32.gmra.mxu1 %v68_v40 }
  0x4c   :  { %688 = vmatprep.mubr.msk.f32.mxu0 %vm132_vm0, %v61_v41  ;;  %693 = vmatprep.mubr.msk.f32.mxu1 %vm132_vm0, %v71_v43 }
  0x4f   :  { %252 = vmatmul.mubr.f32.gmra.mxu0 %v60_v45  ;;  %282 = vmatmul.mubr.f32.gmra.mxu1 %v70_v46 }
  0xff   :  { %v1115_v47 = vpop.f32.mrf.mxu0  ;;  %v1117_v48 = vpop.f32.mrf.mxu1 }
 0x100   :  { %v349_v62 = vmul.f32 %v1117_v48, %v1117_v48  ;;  %v339_v63 = vmul.f32 %v1115_v47, %v1115_v47 }
 0x101   :  { %v1119_v49 = vpop.f32.mrf.mxu0  ;;  %v1121_v50 = vpop.f32.mrf.mxu1 }
 0x102   :  { %v340_v51 = vmul.f32 %v1119_v49, %v1119_v49  ;;  %v350_v52 = vmul.f32 %v1121_v50, %v1121_v50  ;;  %v309_v53 = vsel %vm288_vm1, %v1121_v50, 0.0  ;;  %v289_v54 = vsel %vm288_vm1, %v1119_v49, 0.0 }
 0x103   :  { %v1131_v55 = vpop.f32.mrf.mxu0  ;;  %v310_v56 = vadd.f32 %v309_v53, %v1117_v48  ;;  %v290_v57 = vadd.f32 %v289_v54, %v1115_v47  ;;  %v1135_v58 = vpop.f32.mrf.mxu1 }
 0x104   :  { %v379_v59 = vsel %vm288_vm1, %v350_v52, 0.0  ;;  %v359_v60 = vsel %vm288_vm1, %v340_v51, 0.0  ;;  %v341_v7 = vmul.f32 %v1131_v55, %v1131_v55  ;;  %v351_v25 = vmul.f32 %v1135_v58, %v1135_v58 }
 0x105   :  { %311 = vadd.xlane.f32.xlu1 %v310_v56  ;;  %291 = vadd.xlane.f32.xlu0 %v290_v57  ;;  %v1139_v61 = vpop.f32.mrf.mxu0  ;;  %v1145_v0 = vpop.f32.mrf.mxu1  ;;  %v380_v5 = vadd.f32 %v379_v59, %v349_v62  ;;  %v360_v6 = vadd.f32 %v359_v60, %v339_v63 }
 0x106   :  { %v342_v1 = vmul.f32 %v1139_v61, %v1139_v61  ;;  %v293_v9 = vsel %vm288_vm1, %v1139_v61, 0.0  ;;  %v352_v16 = vmul.f32 %v1145_v0, %v1145_v0  ;;  %v313_v17 = vsel %vm288_vm1, %v1145_v0, 0.0 }
 0x107   :  { %v1149_v2 = vpop.f32.mrf.mxu0  ;;  %v1158_v13 = vpop.f32.mrf.mxu1  ;;  %v294_v15 = vadd.f32 %v293_v9, %v1131_v55  ;;  %v314_v23 = vadd.f32 %v313_v17, %v1135_v58 }
 0x108   :  { %v363_v8 = vsel %vm288_vm1, %v342_v1, 0.0  ;;  %v383_v28 = vsel %vm288_vm1, %v352_v16, 0.0  ;;  %v343_v36 = vmul.f32 %v1149_v2, %v1149_v2  ;;  %v353_v39 = vmul.f32 %v1158_v13, %v1158_v13 }
 0x109   :  { %381 = vadd.xlane.f32.xlu1 %v380_v5  ;;  %361 = vadd.xlane.f32.xlu0 %v360_v6  ;;  %v1156_v12 = vpop.f32.mrf.mxu0  ;;  %v364_v14 = vadd.f32 %v363_v8, %v341_v7  ;;  %v1167_v19 = vpop.f32.mrf.mxu1  ;;  %v384_v34 = vadd.f32 %v383_v28, %v351_v25  ;;  %v785_v28 = vmov 112  }
 0x10a   :  { %v297_v18 = vsel %vm288_vm1, %v1156_v12, 0.0  ;;  %v344_v26 = vmul.f32 %v1156_v12, %v1156_v12  ;;  %v354_v27 = vmul.f32 %v1167_v19, %v1167_v19  ;;  %v317_v31 = vsel %vm288_vm1, %v1167_v19, 0.0  ;;  %758 = vset.pattern.permute.xlu1 %v785_v28  ;;  %757 = vset.pattern.permute.xlu0 %v785_v28 }
 0x10b   :  { %v1169_v20 = vpop.f32.mrf.mxu0  ;;  %v298_v24 = vadd.f32 %v297_v18, %v1149_v2  ;;  %v1182_v32 = vpop.f32.mrf.mxu1  ;;  %v318_v35 = vadd.f32 %v317_v31, %v1158_v13 }
 0x10c   :  { %v367_v40 = vsel %vm288_vm1, %v344_v26, 0.0  ;;  %v387_v41 = vsel %vm288_vm1, %v354_v27, 0.0  ;;  %v345_v59 = vmul.f32 %v1169_v20, %v1169_v20 }
 0x10d   :  { %365 = vadd.xlane.f32.xlu1 %v364_v14  ;;  %295 = vadd.xlane.f32.xlu0 %v294_v15  ;;  %v1184_v33 = vpop.f32.mrf.mxu0  ;;  %v1193_v42 = vpop.f32.mrf.mxu1  ;;  %v368_v44 = vadd.f32 %v367_v40, %v343_v36  ;;  %v388_v45 = vadd.f32 %v387_v41, %v353_v39 }
 0x10e   :  { %v346_v46 = vmul.f32 %v1184_v33, %v1184_v33  ;;  %v321_v51 = vsel %vm288_vm1, %v1193_v42, 0.0  ;;  %v301_v52 = vsel %vm288_vm1, %v1184_v33, 0.0  ;;  %v356_v8 = vmul.f32 %v1193_v42, %v1193_v42 }
 0x10f   :  { %v1195_v43 = vpop.f32.mrf.mxu0  ;;  %v1205_v54 = vpop.f32.mrf.mxu1  ;;  %v322_v56 = vadd.f32 %v321_v51, %v1182_v32  ;;  %v302_v57 = vadd.f32 %v301_v52, %v1169_v20 }
 0x110   :  { %v371_v63 = vsel %vm288_vm1, %v346_v46, 0.0  ;;  %v347_v7 = vmul.f32 %v1195_v43, %v1195_v43  ;;  %v357_v18 = vmul.f32 %v1205_v54, %v1205_v54  ;;  %v391_v25 = vsel %vm288_vm1, %v356_v8, 0.0 }
 0x111   :  { %315 = vadd.xlane.f32.xlu0 %v314_v23  ;;  %299 = vadd.xlane.f32.xlu1 %v298_v24  ;;  %v1203_v53 = vpop.f32.mrf.mxu0  ;;  %v1216_v1 = vpop.f32.mrf.mxu1  ;;  %v372_v5 = vadd.f32 %v371_v63, %v345_v59  ;;  %v355_v23 = vmul.f32 %v1182_v32, %v1182_v32 }
 0x112   :  { %v305_v60 = vsel %vm288_vm1, %v1203_v53, 0.0  ;;  %v348_v62 = vmul.f32 %v1203_v53, %v1203_v53  ;;  %v325_v9 = vsel %vm288_vm1, %v1216_v1, 0.0  ;;  %v358_v14 = vmul.f32 %v1216_v1, %v1216_v1 }
 0x113   :  { %v306_v6 = vadd.f32 %v305_v60, %v1195_v43  ;;  %v326_v16 = vadd.f32 %v325_v9, %v1205_v54  ;;  %v392_v27 = vadd.f32 %v391_v25, %v355_v23 }
 0x114   :  { %v375_v15 = vsel %vm288_vm1, %v348_v62, 0.0  ;;  %v395_v24 = vsel %vm288_vm1, %v358_v14, 0.0 }
 0x115   :  { %385 = vadd.xlane.f32.xlu0 %v384_v34  ;;  %319 = vadd.xlane.f32.xlu1 %v318_v35  ;;  %v376_v17 = vadd.f32 %v375_v15, %v347_v7  ;;  %v396_v26 = vadd.f32 %v395_v24, %v357_v18 }
 0x119   :  { %369 = vadd.xlane.f32.xlu0 %v368_v44  ;;  %389 = vadd.xlane.f32.xlu1 %v388_v45 }
 0x11d   :  { %323 = vadd.xlane.f32.xlu0 %v322_v56  ;;  %303 = vadd.xlane.f32.xlu1 %v302_v57 }
 0x121   :  { %373 = vadd.xlane.f32.xlu1 %v372_v5  ;;  %307 = vadd.xlane.f32.xlu0 %v306_v6 }
 0x125   :  { %327 = vadd.xlane.f32.xlu1 %v326_v16  ;;  %377 = vadd.xlane.f32.xlu0 %v376_v17 }
 0x129   :  { %397 = vadd.xlane.f32.xlu1 %v396_v26  ;;  %393 = vadd.xlane.f32.xlu0 %v392_v27 }
 0x18e   :  { %v312_v31 = vpop.xlane.xlu1 %311  ;;  %v292_v34 = vpop.xlane.xlu0 %291 }
 0x18f   :  { %v334_v35 = vmul.f32 0.0051020407, %v312_v31  ;;  %v329_v36 = vmul.f32 0.0051020407, %v292_v34 }
 0x191   :  { %v414_v41 = vmul.f32 %v334_v35, %v334_v35  ;;  %v409_v44 = vmul.f32 %v329_v36, %v329_v36 }
 0x192   :  { %v382_v39 = vpop.xlane.xlu1 %381  ;;  %v362_v40 = vpop.xlane.xlu0 %361 }
 0x193   :  { %v404_v45 = vmul.f32 0.0051020407, %v382_v39  ;;  %v399_v46 = vmul.f32 0.0051020407, %v362_v40 }
 0x195   :  { %v424_v51 = vsub.f32 %v404_v45, %v414_v41  ;;  %v419_v52 = vsub.f32 %v399_v46, %v409_v44 }
 0x196   :  { %v366_v56 = vpop.xlane.xlu1 %365  ;;  %v296_v57 = vpop.xlane.xlu0 %295 }
 0x197   :  { %v434_v59 = vadd.f32 1e-05, %v424_v51  ;;  %v429_v60 = vadd.f32 1e-05, %v419_v52  ;;  %v330_v62 = vmul.f32 0.0051020407, %v296_v57 }
 0x198   :  { %v400_v63 = vmul.f32 0.0051020407, %v366_v56 }
 0x199   :  { %765 = vrsqrt.f32 %v434_v59  ;;  %v410_v5 = vmul.f32 %v330_v62, %v330_v62 }
 0x19a   :  { %767 = vrsqrt.f32 %v429_v60  ;;  %v316_v6 = vpop.xlane.xlu0 %315  ;;  %v300_v7 = vpop.xlane.xlu1 %299 }
 0x19b   :  { %v1235_v8 = vmul.f32 0.0051020407, %v316_v6  ;;  %v420_v9 = vsub.f32 %v400_v63, %v410_v5  ;;  %v1237_v15 = vmul.f32 0.0051020407, %v300_v7 }
 0x19d   :  { %v430_v14 = vadd.f32 1e-05, %v420_v9  ;;  %v415_v18 = vmul.f32 %v1235_v8, %v1235_v8  ;;  %v411_v26 = vmul.f32 %v1237_v15, %v1237_v15 }
 0x19e   :  { %v386_v16 = vpop.xlane.xlu0 %385  ;;  %v320_v17 = vpop.xlane.xlu1 %319 }
 0x19f   :  { %v405_v23 = vmul.f32 0.0051020407, %v386_v16  ;;  %v1241_v24 = vmul.f32 0.0051020407, %v320_v17  ;;  %769 = vrsqrt.f32 %v430_v14 }
 0x1a1   :  { %v425_v25 = vsub.f32 %v405_v23, %v415_v18  ;;  %v416_v34 = vmul.f32 %v1241_v24, %v1241_v24 }
 0x1a2   :  { %v370_v27 = vpop.xlane.xlu0 %369  ;;  %v390_v28 = vpop.xlane.xlu1 %389 }
 0x1a3   :  { %v435_v31 = vadd.f32 1e-05, %v425_v25  ;;  %v401_v39 = vmul.f32 0.0051020407, %v370_v27  ;;  %v406_v40 = vmul.f32 0.0051020407, %v390_v28 }
 0x1a5   :  { %771 = vrsqrt.f32 %v435_v31  ;;  %v421_v41 = vsub.f32 %v401_v39, %v411_v26  ;;  %v426_v44 = vsub.f32 %v406_v40, %v416_v34 }
 0x1a6   :  { %v766_v45 = vpop.eup %765  ;;  %v324_v46 = vpop.xlane.xlu0 %323 }
 0x1a7   :  { %v304_v51 = vpop.xlane.xlu1 %303  ;;  %v768_v52 = vpop.eup %767  ;;  %v431_v56 = vadd.f32 1e-05, %v421_v41  ;;  %v436_v57 = vadd.f32 1e-05, %v426_v44  ;;  %v1248_v59 = vmul.f32 %v766_v45, %v992_v4  ;;  %v337_v26 = vmul.f32 0.0051020407, %v324_v46 }
 0x1a8   :  { %v332_v60 = vmul.f32 0.0051020407, %v304_v51  ;;  %v1251_v63 = vmul.f32 %v768_v52, %v987_v3 }
 0x1a9   :  { %773 = vrsqrt.f32 %v431_v56  ;;  %v464_v5 = vmul.f32 %v1248_v59, %v334_v35  ;;  %v417_v44 = vmul.f32 %v337_v26, %v337_v26 }
 0x1aa   :  { %775 = vrsqrt.f32 %v436_v57  ;;  %v308_v7 = vpop.xlane.xlu0 %307  ;;  %v459_v9 = vmul.f32 %v1251_v63, %v329_v36  ;;  %v412_v14 = vmul.f32 %v332_v60, %v332_v60 }
 0x1ab   :  { %v374_v6 = vpop.xlane.xlu1 %373  ;;  %v333_v17 = vmul.f32 0.0051020407, %v308_v7  ;;  %489 = vrot.lane.b32.xlu1 %v464_v5, %s786_s2 }
 0x1ac   :  { %v402_v16 = vmul.f32 0.0051020407, %v374_v6  ;;  %479 = vrot.lane.b32.xlu0 %v459_v9, %s786_s2  ;;  %v770_v18 = vpop.eup %769 }
 0x1ad   :  { %v450_v25 = vmul.f32 %v770_v18, %v1011_v10  ;;  %v413_v31 = vmul.f32 %v333_v17, %v333_v17 }
 0x1ae   :  { %v422_v23 = vsub.f32 %v402_v16, %v412_v14  ;;  %v378_v35 = vpop.xlane.xlu0 %377 }
 0x1af   :  { %v328_v27 = vpop.xlane.xlu1 %327  ;;  %v403_v39 = vmul.f32 0.0051020407, %v378_v35  ;;  %v460_v36 = vmul.f32 %v450_v25, %v330_v62 }
 0x1b0   :  { %v432_v28 = vadd.f32 1e-05, %v422_v23  ;;  %v338_v34 = vmul.f32 0.0051020407, %v328_v27 }
 0x1b1   :  { %v423_v40 = vsub.f32 %v403_v39, %v413_v31  ;;  %481 = vrot.lane.b32.xlu1 %v460_v36, %s786_s2 }
 0x1b2   :  { %777 = vrsqrt.f32 %v432_v28  ;;  %v772_v41 = vpop.eup %771  ;;  %v418_v45 = vmul.f32 %v338_v34, %v338_v34  ;;  %v394_v52 = vpop.xlane.xlu0 %393 }
 0x1b3   :  { %v398_v51 = vpop.xlane.xlu1 %397  ;;  %v433_v56 = vadd.f32 1e-05, %v423_v40  ;;  %v407_v5 = vmul.f32 0.0051020407, %v394_v52  ;;  %v455_v46 = vmul.f32 %v772_v41, %v1016_v11 }
 0x1b4   :  { %v408_v57 = vmul.f32 0.0051020407, %v398_v51 }
 0x1b5   :  { %779 = vrsqrt.f32 %v433_v56  ;;  %v427_v7 = vsub.f32 %v407_v5, %v417_v44  ;;  %v465_v9 = vmul.f32 %v455_v46, %v1235_v8 }
 0x1b6   :  { %v428_v6 = vsub.f32 %v408_v57, %v418_v45  ;;  %v774_v62 = vpop.eup %773 }
 0x1b7   :  { %v776_v14 = vpop.eup %775  ;;  %v437_v18 = vadd.f32 1e-05, %v427_v7  ;;  %491 = vrot.lane.b32.xlu0 %v465_v9, %s786_s2  ;;  %v451_v23 = vmul.f32 %v774_v62, %v1040_v21 }
 0x1b8   :  { %v438_v16 = vadd.f32 1e-05, %v428_v6  ;;  %v456_v35 = vmul.f32 %v776_v14, %v1045_v22 }
 0x1b9   :  { %v461_v27 = vmul.f32 %v451_v23, %v1237_v15 }
 0x1ba   :  { %781 = vrsqrt.f32 %v438_v16  ;;  %v466_v28 = vmul.f32 %v456_v35, %v1241_v24 }
 0x1bb   :  { %783 = vrsqrt.f32 %v437_v18  ;;  %483 = vrot.lane.b32.xlu1 %v461_v27, %s786_s2 }
 0x1bf   :  { %v778_v31 = vpop.eup %777  ;;  %493 = vrot.lane.b32.xlu1 %v466_v28, %s786_s2 }
 0x1c0   :  { %v452_v8 = vmul.f32 %v778_v31, %v1066_v29 }
 0x1c2   :  { %v462_v39 = vmul.f32 %v452_v8, %v332_v60  ;;  %v780_v36 = vpop.eup %779  ;;  %v787_v60 = vmov 113  }
 0x1c3   :  { %v453_v40 = vmul.f32 %v780_v36, %v1090_v37 }
 0x1c4   :  { %485 = vrot.lane.b32.xlu1 %v462_v39, %s786_s2 }
 0x1c5   :  { %v463_v41 = vmul.f32 %v453_v40, %v333_v17 }
 0x1c7   :  { %v782_v15 = vpop.eup %781  ;;  %487 = vrot.lane.b32.xlu0 %v463_v41, %s786_s2 }
 0x1c8   :  { %v784_v44 = vpop.eup %783  ;;  %v458_v45 = vmul.f32 %v782_v15, %v1095_v38 }
 0x1c9   :  { %v457_v24 = vmul.f32 %v784_v44, %v1071_v30 }
 0x1ca   :  { %v468_v51 = vmul.f32 %v458_v45, %v338_v34 }
 0x1cb   :  { %v467_v52 = vmul.f32 %v457_v24, %v337_v26 }
 0x1cc   :  { %497 = vrot.lane.b32.xlu1 %v468_v51, %s786_s2 }
 0x1cd   :  { %495 = vrot.lane.b32.xlu0 %v467_v52, %s786_s2 }
 0x1d0   :  { %526 = vperm.xlu1 %758, %v450_v25  }
 0x1d1   :  { %521 = vperm.xlu0 %757, %v1251_v63  }
 0x1d4   :  { %531 = vperm.xlu1 %758, %v451_v23  }
 0x1d5   :  { %536 = vperm.xlu0 %757, %v452_v8  }
 0x1d8   :  { %541 = vperm.xlu1 %758, %v453_v40  }
 0x1d9   :  { %546 = vperm.xlu0 %757, %v1248_v59  }
 0x1dc   :  { %551 = vperm.xlu1 %758, %v455_v46  }
 0x1dd   :  { %556 = vperm.xlu0 %757, %v456_v35  }
 0x1e0   :  { %561 = vperm.xlu1 %758, %v457_v24  }
 0x1e1   :  { %566 = vperm.xlu0 %757, %v458_v45  }
 0x1e4   :  { %759 = vset.pattern.permute.xlu1 %v787_v60 }
 0x1e5   :  { %760 = vset.pattern.permute.xlu0 %v787_v60 }
 0x21d   :  { %v490_v34 = vpop.permute.xlu1 %489 }
 0x21e   :  { %v480_v17 = vpop.permute.xlu0 %479  ;;  %v514_v25 = vsub.f32 %v992_v4, %v490_v34 }
 0x21f   :  { %v509_v26 = vsub.f32 %v987_v3, %v480_v17 }
 0x221   :  { %591 = vperm.xlu1 %759, %v509_v26  }
 0x223   :  { %v482_v63 = vpop.permute.xlu1 %481 }
 0x224   :  { %v510_v56 = vsub.f32 %v1011_v10, %v482_v63 }
 0x225   :  { %616 = vperm.xlu1 %759, %v514_v25  }
 0x226   :  { %596 = vperm.xlu0 %760, %v510_v56  }
 0x229   :  { %v492_v59 = vpop.permute.xlu0 %491 }
 0x22a   :  { %v515_v57 = vsub.f32 %v1016_v11, %v492_v59 }
 0x22c   :  { %621 = vperm.xlu0 %760, %v515_v57  }
 0x22d   :  { %v484_v5 = vpop.permute.xlu1 %483 }
 0x22e   :  { %v511_v46 = vsub.f32 %v1040_v21, %v484_v5 }
 0x230   :  { %601 = vperm.xlu1 %759, %v511_v46  }
 0x231   :  { %v494_v6 = vpop.permute.xlu1 %493 }
 0x232   :  { %v516_v3 = vsub.f32 %v1045_v22, %v494_v6 }
 0x234   :  { %626 = vperm.xlu1 %759, %v516_v3  }
 0x236   :  { %v486_v7 = vpop.permute.xlu1 %485 }
 0x237   :  { %v512_v4 = vsub.f32 %v1066_v29, %v486_v7 }
 0x239   :  { %606 = vperm.xlu1 %759, %v512_v4   ;;  %v488_v9 = vpop.permute.xlu0 %487 }
 0x23a   :  { %v513_v10 = vsub.f32 %v1090_v37, %v488_v9 }
 0x23c   :  { %611 = vperm.xlu0 %760, %v513_v10  }
 0x23e   :  { %v498_v62 = vpop.permute.xlu1 %497 }
 0x23f   :  { %v518_v11 = vsub.f32 %v1095_v38, %v498_v62  ;;  %v496_v14 = vpop.permute.xlu0 %495 }
 0x240   :  { %v517_v16 = vsub.f32 %v1071_v30, %v496_v14 }
 0x241   :  { %636 = vperm.xlu1 %759, %v518_v11  }
 0x242   :  { %631 = vperm.xlu0 %760, %v517_v16  }
 0x24b   :  { %v527_v21 = vpop.permute.xlu1 %526 }
 0x24c   :  { %v522_v18 = vpop.permute.xlu0 %521  ;;  %v572_v15 = vmul.f32 %v527_v21, %v1139_v61 }
 0x24d   :  { %v569_v37 = vmul.f32 %v522_v18, %v1115_v47  ;;  %v570_v8 = vmul.f32 %v522_v18, %v1119_v49  ;;  %v571_v49 = vmul.f32 %v527_v21, %v1131_v55 }
 0x24f   :  { %v532_v22 = vpop.permute.xlu1 %531 }
 0x250   :  { %v537_v23 = vpop.permute.xlu0 %536  ;;  %v573_v17 = vmul.f32 %v532_v22, %v1149_v2  ;;  %v574_v26 = vmul.f32 %v532_v22, %v1156_v12 }
 0x251   :  { %v575_v59 = vmul.f32 %v537_v23, %v1169_v20  ;;  %v576_v57 = vmul.f32 %v537_v23, %v1184_v33 }
 0x253   :  { %v542_v27 = vpop.permute.xlu1 %541 }
 0x254   :  { %v547_v35 = vpop.permute.xlu0 %546  ;;  %v577_v46 = vmul.f32 %v542_v27, %v1195_v43  ;;  %v578_v6 = vmul.f32 %v542_v27, %v1203_v53 }
 0x255   :  { %v579_v30 = vmul.f32 %v547_v35, %v1117_v48  ;;  %v580_v41 = vmul.f32 %v547_v35, %v1121_v50 }
 0x257   :  { %v552_v29 = vpop.permute.xlu1 %551 }
 0x258   :  { %v557_v28 = vpop.permute.xlu0 %556  ;;  %v581_v55 = vmul.f32 %v552_v29, %v1135_v58  ;;  %v582_v61 = vmul.f32 %v552_v29, %v1145_v0 }
 0x259   :  { %v583_v0 = vmul.f32 %v557_v28, %v1158_v13  ;;  %v584_v63 = vmul.f32 %v557_v28, %v1167_v19 }
 0x25b   :  { %v562_v31 = vpop.permute.xlu1 %561 }
 0x25c   :  { %v567_v40 = vpop.permute.xlu0 %566  ;;  %v585_v43 = vmul.f32 %v562_v31, %v1182_v32  ;;  %v586_v53 = vmul.f32 %v562_v31, %v1193_v42 }
 0x25d   :  { %v587_v7 = vmul.f32 %v567_v40, %v1205_v54  ;;  %v588_v4 = vmul.f32 %v567_v40, %v1216_v1 }
 0x29c   :  { %v592_v39 = vpop.permute.xlu1 %591 }
 0x29d   :  { %v639_v38 = vadd.f32 %v592_v39, %v569_v37  ;;  %v640_v36 = vadd.f32 %v592_v39, %v570_v8 }
 0x29f   :  { %659 = vst [vmem:[%s1381_s3] sm:$0xff] %v639_v38  ;;  %660 = vst.msk [vmem:[%s1381_s3 + $0x8] sm:$0xff] %vm288_vm1, %v640_v36 }
 0x2a0   :  { %v617_v47 = vpop.permute.xlu1 %616 }
 0x2a1   :  { %v649_v44 = vadd.f32 %v617_v47, %v579_v30  ;;  %v650_v45 = vadd.f32 %v617_v47, %v580_v41  ;;  %v597_v24 = vpop.permute.xlu0 %596 }
 0x2a2   :  { %v641_v48 = vadd.f32 %v597_v24, %v571_v49  ;;  %v642_v50 = vadd.f32 %v597_v24, %v572_v15 }
 0x2a3   :  { %669 = vst [vmem:[%s1381_s3 + $0x50] sm:$0xff] %v649_v44  ;;  %670 = vst.msk [vmem:[%s1381_s3 + $0x58] sm:$0xff] %vm288_vm1, %v650_v45 }
 0x2a4   :  { %661 = vst [vmem:[%s1381_s3 + $0x10] sm:$0xff] %v641_v48  ;;  %662 = vst.msk [vmem:[%s1381_s3 + $0x18] sm:$0xff] %vm288_vm1, %v642_v50 }
 0x2a7   :  { %v622_v51 = vpop.permute.xlu0 %621 }
 0x2a8   :  { %v651_v52 = vadd.f32 %v622_v51, %v581_v55  ;;  %v652_v60 = vadd.f32 %v622_v51, %v582_v61 }
 0x2aa   :  { %671 = vst [vmem:[%s1381_s3 + $0x60] sm:$0xff] %v651_v52  ;;  %672 = vst.msk [vmem:[%s1381_s3 + $0x68] sm:$0xff] %vm288_vm1, %v652_v60 }
 0x2ab   :  { %v602_v34 = vpop.permute.xlu1 %601 }
 0x2ac   :  { %v643_v58 = vadd.f32 %v602_v34, %v573_v17  ;;  %v644_v25 = vadd.f32 %v602_v34, %v574_v26 }
 0x2ae   :  { %663 = vst [vmem:[%s1381_s3 + $0x20] sm:$0xff] %v643_v58  ;;  %664 = vst.msk [vmem:[%s1381_s3 + $0x28] sm:$0xff] %vm288_vm1, %v644_v25 }
 0x2af   :  { %v627_v2 = vpop.permute.xlu1 %626 }
 0x2b0   :  { %v653_v12 = vadd.f32 %v627_v2, %v583_v0  ;;  %v654_v56 = vadd.f32 %v627_v2, %v584_v63 }
 0x2b2   :  { %673 = vst [vmem:[%s1381_s3 + $0x70] sm:$0xff] %v653_v12  ;;  %674 = vst.msk [vmem:[%s1381_s3 + $0x78] sm:$0xff] %vm288_vm1, %v654_v56 }
 0x2b4   :  { %v607_v13 = vpop.permute.xlu1 %606 }
 0x2b5   :  { %v645_v19 = vadd.f32 %v607_v13, %v575_v59  ;;  %v646_v5 = vadd.f32 %v607_v13, %v576_v57 }
 0x2b7   :  { %665 = vst [vmem:[%s1381_s3 + $0x30] sm:$0xff] %v645_v19  ;;  %666 = vst.msk [vmem:[%s1381_s3 + $0x38] sm:$0xff] %vm288_vm1, %v646_v5  ;;  %v612_v20 = vpop.permute.xlu0 %611 }
 0x2b8   :  { %v647_v33 = vadd.f32 %v612_v20, %v577_v46  ;;  %v648_v3 = vadd.f32 %v612_v20, %v578_v6 }
 0x2ba   :  { %667 = vst [vmem:[%s1381_s3 + $0x40] sm:$0xff] %v647_v33  ;;  %668 = vst.msk [vmem:[%s1381_s3 + $0x48] sm:$0xff] %vm288_vm1, %v648_v3 }
 0x2bc   :  { %v637_v9 = vpop.permute.xlu1 %636 }
 0x2bd   :  { %v657_v10 = vadd.f32 %v637_v9, %v587_v7  ;;  %v658_v62 = vadd.f32 %v637_v9, %v588_v4  ;;  %v632_v11 = vpop.permute.xlu0 %631 }
 0x2be   :  { %v655_v54 = vadd.f32 %v632_v11, %v585_v43  ;;  %v656_v14 = vadd.f32 %v632_v11, %v586_v53 }
 0x2bf   :  { %677 = vst [vmem:[%s1381_s3 + $0x90] sm:$0xff] %v657_v10  ;;  %678 = vst.msk [vmem:[%s1381_s3 + $0x98] sm:$0xff] %vm288_vm1, %v658_v62 }
 0x2c0   :  { %675 = vst [vmem:[%s1381_s3 + $0x80] sm:$0xff] %v655_v54  ;;  %676 = vst.msk [vmem:[%s1381_s3 + $0x88] sm:$0xff] %vm288_vm1, %v656_v14 }

</bundles_post_ra>
